<compile_context>
chip_gen: v5e
topology: v5e:2x2
jax: 0.10.0
libtpu: 0.0.40
codegen_flags: <defaults>
</compile_context>

<pallas_src>
import functools
import math

import jax
import jax.numpy as jnp
from jax.experimental import pallas as pl
from jax.experimental.pallas import tpu as pltpu


def _round_up(v, k):
    return ((v + k - 1) // k) * k


def _lff_kernel(x_ref, w_ref, o_ref, *, scale):
    # x_ref : (TM, xdim)      input row tile
    # w_ref : (half, xdim)    Linear weight, PyTorch (out_features, in_features)
    # o_ref : (TM, 2, half)   [:, 0, :] = cos, [:, 1, :] = sin
    z = jnp.einsum(
        "mk,hk->mh",
        x_ref[...],
        w_ref[...],
        preferred_element_type=jnp.float32,
    )  # (TM, half), f32 accumulate
    o_ref[:, 0, :] = (jnp.cos(z) * scale).astype(o_ref.dtype)
    o_ref[:, 1, :] = (jnp.sin(z) * scale).astype(o_ref.dtype)


def learnable_fourier_features(x, weight, fdim, *, tm=1024):
    """x: (..., xdim). weight: (fdim//2, xdim) (PyTorch Linear layout)."""
    assert fdim % 2 == 0, "fdim must be even (cos/sin halves)"
    half = fdim // 2
    xdim = x.shape[-1]
    assert weight.shape == (half, xdim)

    lead = x.shape[:-1]
    m = 1
    for d in lead:
        m *= int(d)

    x2d = x.reshape(m, xdim)
    out_dtype = x.dtype
    itemsize = jnp.dtype(out_dtype).itemsize
    scale = 1.0 / math.sqrt(fdim)

    # Row-tile size: multiple of 8 (f32 sublane), capped so the double-buffered
    # output tile stays well under the 32 MiB default scoped VMEM (v7x-safe).
    vmem_budget = 16 * 1024 * 1024
    tm_cap = max(8, (vmem_budget // (2 * fdim * itemsize)) // 8 * 8)
    TM = min(tm, tm_cap, _round_up(m, 8))
    grid = (pl.cdiv(m, TM),)

    kernel = functools.partial(_lff_kernel, scale=scale)

    cost = pl.CostEstimate(
        flops=2 * m * xdim * half,
        transcendentals=m * fdim,
        bytes_accessed=(
            m * xdim * jnp.dtype(x2d.dtype).itemsize
            + half * xdim * jnp.dtype(weight.dtype).itemsize
            + m * fdim * itemsize
        ),
    )

    out3d = pl.pallas_call(
        kernel,
        out_shape=jax.ShapeDtypeStruct((m, 2, half), out_dtype),
        grid=grid,
        in_specs=[
            pl.BlockSpec((TM, xdim), lambda i: (i, 0)),       # streamed row tiles
            pl.BlockSpec((half, xdim), lambda i: (0, 0)),     # weight stays resident
        ],
        out_specs=pl.BlockSpec((TM, 2, half), lambda i: (i, 0, 0)),
        compiler_params=pltpu.CompilerParams(
            dimension_semantics=("parallel",),
        ),
        cost_estimate=cost,
    )(x2d, weight)

    # (M, 2, half) -> (..., fdim); identical memory layout to concat([cos, sin], -1).
    return out3d.reshape(*lead, fdim)


def _reference(x, weight, fdim):
    z = x @ weight.T
    return jnp.concatenate([jnp.cos(z), jnp.sin(z)], axis=-1) * (1.0 / math.sqrt(fdim))


if __name__ == "__main__":
    # Shapes consistent with the module's forward:
    # x: (batch=2, seq=8, xdim=4), fdim=32  ->  out: (2, 8, 32)
    batch, seq, xdim, fdim = 2, 8, 4, 32
    half = fdim // 2

    key = jax.random.PRNGKey(0)
    kx, kw, kx2 = jax.random.split(key, 3)
    x = jax.random.normal(kx, (batch, seq, xdim), dtype=jnp.float32)
    # Deterministic synthetic init of nn.Linear(xdim, fdim//2, bias=False).weight
    # (PyTorch layout: (out_features, in_features)); uniform(-1/sqrt(xdim), 1/sqrt(xdim)).
    bound = 1.0 / math.sqrt(xdim)
    weight = jax.random.uniform(
        kw, (half, xdim), dtype=jnp.float32, minval=-bound, maxval=bound
    )

    out = learnable_fourier_features(x, weight, fdim)
    out = jax.block_until_ready(out)
    ref = _reference(x, weight, fdim)
    assert out.shape == (batch, seq, fdim)
    assert jnp.allclose(out, ref, atol=1e-5, rtol=1e-5), "mismatch vs reference"

    # Second check: force a multi-tile grid with a partial (masked) last block
    # (m = 3*5 = 15 rows, TM = 8 -> grid of 2) to exercise the tiled path.
    x2 = jax.random.normal(kx2, (3, 5, xdim), dtype=jnp.float32)
    out2 = learnable_fourier_features(x2, weight, fdim, tm=8)
    out2 = jax.block_until_ready(out2)
    ref2 = _reference(x2, weight, fdim)
    assert out2.shape == (3, 5, fdim)
    assert jnp.allclose(out2, ref2, atol=1e-5, rtol=1e-5), "mismatch vs reference (tiled)"

    print("KERNEL_OK")
</pallas_src>

<mosaic_0001>
module attributes {stable_mosaic.version = 11 : i64} {
  func.func @_lff_kernel(%arg0: i32, %arg1: memref<16x4xf32, #tpu.memory_space<vmem>>, %arg2: memref<16x4xf32, #tpu.memory_space<vmem>>, %arg3: memref<16x2x16xf32, #tpu.memory_space<vmem>>) attributes {dimension_semantics = [#tpu.dimension_semantics<parallel>], iteration_bounds = array<i64: 1>, scalar_prefetch = 0 : i64, scratch_operands = 0 : i64, tpu.core_type = #tpu.core_type<tc>, window_params = [{transform_indices = @transform_0, window_bounds = array<i64: 16, 4>}, {pipeline_mode = #tpu.pipeline_mode<synchronous>, transform_indices = @transform_1, window_bounds = array<i64: 16, 4>}, {transform_indices = @transform_2, window_bounds = array<i64: 16, 2, 16>}]} {
    %c0 = arith.constant 0 : index
    %c0_0 = arith.constant 0 : index
    %0 = vector.load %arg1[%c0, %c0_0] : memref<16x4xf32, #tpu.memory_space<vmem>>, vector<16x4xf32>
    %c0_1 = arith.constant 0 : index
    %c0_2 = arith.constant 0 : index
    %1 = vector.load %arg2[%c0_1, %c0_2] : memref<16x4xf32, #tpu.memory_space<vmem>>, vector<16x4xf32>
    "tpu.trace_start"() <{level = 10 : i32, message = "mk,hk->mh"}> : () -> ()
    %cst = arith.constant dense<0.000000e+00> : vector<16x16xf32>
    %2 = tpu.matmul %0, %1, %cst {dimension_numbers = #tpu.dot_dimension_numbers<[1], [1], [0], [0], [0, 0, 1, 0], [], []>} : vector<16x4xf32>, vector<16x4xf32>, vector<16x16xf32> -> vector<16x16xf32>
    "tpu.trace_stop"() : () -> ()
    %3 = math.cos %2 : vector<16x16xf32>
    %cst_3 = arith.constant 0.176776692 : f32
    %4 = vector.broadcast %cst_3 : f32 to vector<16x16xf32>
    %5 = arith.mulf %3, %4 : vector<16x16xf32>
    %c0_4 = arith.constant 0 : index
    %c0_5 = arith.constant 0 : index
    %c0_6 = arith.constant 0 : index
    %6 = vector.load %arg3[%c0_4, %c0_5, %c0_6] : memref<16x2x16xf32, #tpu.memory_space<vmem>>, vector<16x1x16xf32>
    %7 = vector.shape_cast %6 : vector<16x1x16xf32> to vector<16x16xf32>
    %8 = vector.shape_cast %5 : vector<16x16xf32> to vector<16x1x16xf32>
    tpu.vector_store %arg3[%c0_4, %c0_5, %c0_6], %8 {strides = array<i32>} : memref<16x2x16xf32, #tpu.memory_space<vmem>>, vector<16x1x16xf32>,
    %9 = math.sin %2 : vector<16x16xf32>
    %cst_7 = arith.constant 0.176776692 : f32
    %10 = vector.broadcast %cst_7 : f32 to vector<16x16xf32>
    %11 = arith.mulf %9, %10 : vector<16x16xf32>
    %c0_8 = arith.constant 0 : index
    %c1 = arith.constant 1 : index
    %c0_9 = arith.constant 0 : index
    %12 = vector.load %arg3[%c0_8, %c1, %c0_9] : memref<16x2x16xf32, #tpu.memory_space<vmem>>, vector<16x1x16xf32>
    %13 = vector.shape_cast %12 : vector<16x1x16xf32> to vector<16x16xf32>
    %14 = vector.shape_cast %11 : vector<16x16xf32> to vector<16x1x16xf32>
    tpu.vector_store %arg3[%c0_8, %c1, %c0_9], %14 {strides = array<i32>} : memref<16x2x16xf32, #tpu.memory_space<vmem>>, vector<16x1x16xf32>,
    return
  }
  func.func @transform_0(%arg0: i32) -> (i32, i32) {
    %c0_i32 = arith.constant 0 : i32
    %c0_i32_0 = arith.constant 0 : i32
    return %arg0, %c0_i32 : i32, i32
  }
  func.func @transform_1(%arg0: i32) -> (i32, i32) {
    %c0_i32 = arith.constant 0 : i32
    %c0_i32_0 = arith.constant 0 : i32
    %c0_i32_1 = arith.constant 0 : i32
    return %c0_i32, %c0_i32_0 : i32, i32
  }
  func.func @transform_2(%arg0: i32) -> (i32, i32, i32) {
    %c0_i32 = arith.constant 0 : i32
    %c0_i32_0 = arith.constant 0 : i32
    %c0_i32_1 = arith.constant 0 : i32
    return %arg0, %c0_i32, %c0_i32_0 : i32, i32, i32
  }
}

</mosaic_0001>

<bundles_post_ra>
// kernel: tpu_custom_call.1
= control target key start
LH: loop header
LB: loop body
LE: loop exit
PB: predicated region body
PF: predicated region fallthrough
CT: control target
= control target key end

     0   :  { %vm16_vm0 = vcmask 31744   ;;  %s1094_s0 = inlined_call_operand.vmem [shape: f32[16,4], index: 0, kind: input, shape index: {}]   ;;  %s1095_s1 = inlined_call_operand.vmem [shape: f32[16,4], index: 1, kind: input, shape index: {}]   ;;  %s1096_s2 = inlined_call_operand.hbm [shape: f32[16,2,16], index: 2, kind: output, shape index: {}]  }
   0x1   :  { %v15_v0 = vld [vmem:[%s1095_s1 + $0x8] sm:$0xff] }
   0x2   :  { %785 = vmatpush.xpose.msk.msra.mxu0 %vm16_vm0, %v15_v0  ;;  %801 = vmatpush.xpose.msk.msra.mxu1 %vm16_vm0, %v15_v0 }
   0x3   :  { %7 = vsyncpa [#allocation3], 0  ;;  %v14_v1 = vld [vmem:[%s1095_s1] sm:$0xff]  ;;  %v13_v3 = vld [vmem:[%s1094_s0 + $0x8] sm:$0xff]  ;;  %v839_v29 = vmov 683565275  }
   0x4   :  { %v12_v2 = vld [vmem:[%s1094_s0] sm:$0xff]  ;;  %v840_v31 = vmov 2475754826   ;;  %v841_v35 = vmov 2131351028   ;;  %s846_s0 = smov [#allocation2]  }
   0x5   :  { %v842_v38 = vmov 2102212464   ;;  %v843_v41 = vmov 920167782   ;;  %v844_v44 = vmov 1326507024  }
   0x6   :  { %786 = vmatpush.xpose.msk.msra.mxu0 %vm16_vm0, %v14_v1  ;;  %802 = vmatpush.xpose.msk.msra.mxu1 %vm16_vm0, %v14_v1  ;;  %s771_s1 = sshll.u32 %s846_s0, 4  ;;  %s773_s19 = sshll.u32 %s1096_s2, 4  ;;  %s772_s1 = int_to_ptr.vmem [resolvable:$true] %s771_s1  ;;  %s774_s19 = int_to_ptr.hbm [resolvable:$true] %s773_s19 }
   0x7   :  { %s847_s20 = smov 32   ;;  %s848_s21 = smov 2  }
   0x9   :  { %787 = vmatmul.msk.f32.vlgmr.msra.gmra.mxu0 %vm16_vm0, %v12_v2  ;;  %788 = vmatmul.msk.f32.vlgmr.msra.gmra.mxu1 %vm16_vm0, %v13_v3 }
  0x86   :  { %v876_v4 = vpop.f32.mrf.mxu0  ;;  %v878_v5 = vpop.f32.mrf.mxu1 }
  0x87   :  { %v52_v6 = vand.u32 2147483647, %v876_v4  ;;  %v55_v7 = vand.u32 2139095040, %v876_v4  ;;  %v206_v8 = vand.u32 2147483647, %v878_v5  ;;  %v209_v9 = vand.u32 2139095040, %v878_v5 }
  0x89   :  { %v56_v10 = vshrl.u32 %v55_v7, 23  ;;  %v59_v11 = vand.u32 8388607, %v52_v6  ;;  %v210_v12 = vshrl.u32 %v209_v9, 23  ;;  %v213_v15 = vand.u32 8388607, %v206_v8 }
  0x8b   :  { %v789_v13 = vadd.s32 4294967169, %v56_v10  ;;  %v60_v14 = vor.u32 8388608, %v59_v11  ;;  %v792_v16 = vadd.s32 4294967169, %v210_v12  ;;  %v214_v20 = vor.u32 8388608, %v213_v15 }
  0x8d   :  { %v62_v17 = vadd.s32 1, %v789_v13  ;;  %v216_v18 = vadd.s32 1, %v792_v16  ;;  %v888_v19 = vshll.u32 %v60_v14, 8  ;;  %v895_v27 = vshll.u32 %v214_v20, 8 }
  0x8f   :  { %vm63_vm1 = vcmp.gt.s32.totalorder %v62_v17, 0  ;;  %vm217_vm2 = vcmp.gt.s32.totalorder %v216_v18, 0  ;;  %v891_v25 = vand.u32 65535, %v888_v19  ;;  %v102_v33 = vshrl.u32 %v888_v19, 16 }
  0x90   :  { %v64_v21 = vsel %vm63_vm1, %v62_v17, 0  ;;  %v218_v23 = vsel %vm217_vm2, %v216_v18, 0 }
  0x91   :  { %v66_v22 = vand.u32 31, %v64_v21  ;;  %v893_v26 = vand.u32 31, %v218_v23  ;;  %v897_v28 = vshrl.u32 %v64_v21, 5  ;;  %v935_v12 = vshrl.u32 %v218_v23, 5 }
  0x93   :  { %v67_v24 = vsub.s32 32, %v66_v22  ;;  %v69_v30 = vshll.u32 %v839_v29, %v66_v22  ;;  %v72_v32 = vshll.u32 %v840_v31, %v66_v22  ;;  %v75_v37 = vshll.u32 %v841_v35, %v66_v22 }
  0x94   :  { %v78_v40 = vshll.u32 %v842_v38, %v66_v22  ;;  %v81_v43 = vshll.u32 %v843_v41, %v66_v22  ;;  %v907_v49 = vsub.s32 32, %v893_v26  ;;  %vm84_vm3 = vcmp.lt.s32.totalorder %v897_v28, 1 }
  0x95   :  { %v70_v34 = vshrl.u32 %v840_v31, %v67_v24  ;;  %v73_v36 = vshrl.u32 %v841_v35, %v67_v24  ;;  %v76_v39 = vshrl.u32 %v842_v38, %v67_v24  ;;  %v79_v42 = vshrl.u32 %v843_v41, %v67_v24 }
  0x96   :  { %v82_v45 = vshrl.u32 %v844_v44, %v67_v24  ;;  %vm85_vm4 = vcmp.lt.s32.totalorder %v897_v28, 2  ;;  %v68_v52 = vshrl.u32 %v839_v29, %v67_v24  ;;  %vm87_vm5 = vcmp.lt.s32.totalorder %v897_v28, 4 }
  0x97   :  { %v71_v46 = vor.u32 %v70_v34, %v69_v30  ;;  %v74_v47 = vor.u32 %v73_v36, %v72_v32  ;;  %v77_v48 = vor.u32 %v76_v39, %v75_v37  ;;  %v80_v50 = vor.u32 %v79_v42, %v78_v40 }
  0x98   :  { %v83_v51 = vor.u32 %v82_v45, %v81_v43  ;;  %vm86_vm6 = vcmp.lt.s32.totalorder %v897_v28, 3  ;;  %v223_v57 = vshll.u32 %v839_v29, %v893_v26  ;;  %v224_v61 = vshrl.u32 %v840_v31, %v907_v49 }
  0x99   :  { %v92_v53 = vsel %vm84_vm3, %v71_v46, %v74_v47  ;;  %v96_v54 = vsel %vm84_vm3, %v74_v47, %v77_v48  ;;  %v93_v55 = vsel %vm87_vm5, %v80_v50, 920167782  ;;  %v89_v58 = vsel %vm87_vm5, %v77_v48, 2102212464 }
  0x9a   :  { %v97_v56 = vsel %vm87_vm5, %v83_v51, 1326507024  ;;  %v94_v59 = vsel %vm86_vm6, %v77_v48, %v93_v55  ;;  %v226_v0 = vshll.u32 %v840_v31, %v893_v26  ;;  %v227_v1 = vshrl.u32 %v841_v35, %v907_v49 }
  0x9b   :  { %v98_v60 = vsel %vm86_vm6, %v80_v50, %v97_v56  ;;  %v95_v62 = vsel %vm85_vm4, %v92_v53, %v94_v59  ;;  %v88_v10 = vsel %vm84_vm3, %v68_v52, %v71_v46  ;;  %v90_v11 = vsel %vm86_vm6, %v74_v47, %v89_v58 }
  0x9c   :  { %v99_v63 = vsel %vm85_vm4, %v96_v54, %v98_v60  ;;  %v125_v7 = vand.u32 65535, %v95_v62  ;;  %v126_v9 = vshrl.u32 %v95_v62, 16  ;;  %v937_v13 = vor.u32 %v224_v61, %v223_v57 }
  0x9d   :  { %v103_v2 = vand.u32 65535, %v99_v63  ;;  %v104_v3 = vshrl.u32 %v99_v63, 16  ;;  %v940_v16 = vor.u32 %v227_v1, %v226_v0  ;;  %v230_v17 = vshrl.u32 %v842_v38, %v907_v49 }
  0x9e   :  { %v128_v20 = vmul.u32 %v126_v9, %v891_v25  ;;  %v129_v21 = vmul.u32 %v125_v7, %v102_v33  ;;  %v229_v22 = vshll.u32 %v841_v35, %v893_v26  ;;  %v127_v30 = vmul.u32 %v125_v7, %v891_v25 }
  0x9f   :  { %v106_v14 = vmul.u32 %v104_v3, %v891_v25  ;;  %v107_v15 = vmul.u32 %v103_v2, %v102_v33  ;;  %v105_v18 = vmul.u32 %v103_v2, %v891_v25  ;;  %v108_v24 = vmul.u32 %v104_v3, %v102_v33 }
  0xa0   :  { %v130_v31 = vmul.u32 %v126_v9, %v102_v33  ;;  %v131_v37 = vshll.u32 %v128_v20, 16  ;;  %v133_v40 = vshll.u32 %v129_v21, 16  ;;  %v948_v42 = vor.u32 %v230_v17, %v229_v22 }
  0xa1   :  { %v109_v23 = vshll.u32 %v106_v14, 16  ;;  %v110_v32 = vshrl.u32 %v106_v14, 16  ;;  %v111_v34 = vshll.u32 %v107_v15, 16  ;;  %v112_v36 = vshrl.u32 %v107_v15, 16 }
  0xa2   :  { %v845_v43 = vmov 0   ;;  %vm135_vm8 = vc.u32 %v127_v30, %v131_v37  ;;  %v137_v46 = vadd.s32 %v131_v37, %v127_v30  ;;  %v233_v35 = vshrl.u32 %v843_v41, %v907_v49 }
  0xa3   :  { %vm113_vm7 = vc.u32 %v105_v18, %v109_v23  ;;  %v115_v39 = vadd.s32 %v109_v23, %v105_v18  ;;  %v136_v25 = vsel %vm135_vm8, 1, %v845_v43  ;;  %v232_v33 = vshll.u32 %v842_v38, %v893_v26 }
  0xa4   :  { %v114_v45 = vsel %vm113_vm7, 1, %v845_v43  ;;  %v138_v50 = vadd.s32 %v136_v25, %v130_v31  ;;  %vm139_vm10 = vc.u32 %v137_v46, %v133_v40  ;;  %v235_v51 = vshll.u32 %v843_v41, %v893_v26 }
  0xa5   :  { %v116_v47 = vadd.s32 %v114_v45, %v108_v24  ;;  %vm117_vm9 = vc.u32 %v115_v39, %v111_v34  ;;  %v140_v53 = vsel %vm139_vm10, 1, %v845_v43  ;;  %v234_v54 = vor.u32 %v233_v35, %v232_v33 }
  0xa6   :  { %v118_v48 = vsel %vm117_vm9, 1, %v845_v43  ;;  %v236_v55 = vshrl.u32 %v844_v44, %v907_v49  ;;  %v132_v56 = vshrl.u32 %v128_v20, 16  ;;  %v134_v57 = vshrl.u32 %v129_v21, 16 }
  0xa7   :  { %v120_v52 = vadd.s32 %v118_v48, %v116_v47  ;;  %v962_v58 = vadd.s32 %v137_v46, %v133_v40  ;;  %v142_v59 = vadd.s32 %v140_v53, %v138_v50  ;;  %vm238_vm11 = vcmp.lt.s32.totalorder %v935_v12, 1 }
  0xa8   :  { %v237_v60 = vor.u32 %v236_v55, %v235_v51  ;;  %vm241_vm12 = vcmp.lt.s32.totalorder %v935_v12, 4  ;;  %vm240_vm13 = vcmp.lt.s32.totalorder %v935_v12, 3  ;;  %v246_v26 = vsel %vm238_vm11, %v937_v13, %v940_v16 }
  0xa9   :  { %v121_v38 = vadd.s32 %v120_v52, %v110_v32  ;;  %v143_v61 = vadd.s32 %v142_v59, %v132_v56  ;;  %v247_v41 = vsel %vm241_vm12, %v234_v54, 920167782  ;;  %vm239_vm14 = vcmp.lt.s32.totalorder %v935_v12, 2 }
  0xaa   :  { %v248_v62 = vsel %vm240_vm13, %v948_v42, %v247_v41  ;;  %v250_v63 = vsel %vm238_vm11, %v940_v16, %v948_v42  ;;  %v91_v0 = vsel %vm85_vm4, %v88_v10, %v90_v11  ;;  %v251_v3 = vsel %vm241_vm12, %v237_v60, 1326507024 }
  0xab   :  { %v973_v44 = vadd.s32 %v121_v38, %v112_v36  ;;  %v144_v1 = vadd.s32 %v143_v61, %v134_v57  ;;  %v249_v2 = vsel %vm239_vm14, %v246_v26, %v248_v62  ;;  %v252_v7 = vsel %vm240_vm13, %v234_v54, %v251_v3 }
  0xac   :  { %v255_v9 = vand.u32 65535, %v895_v27  ;;  %v279_v14 = vand.u32 65535, %v249_v2  ;;  %v253_v28 = vsel %vm239_vm14, %v250_v63, %v252_v7  ;;  %v256_v10 = vshrl.u32 %v895_v27, 16 }
  0xad   :  { %vm147_vm15 = vc.u32 %v973_v44, %v962_v58  ;;  %v148_v15 = vadd.s32 1, %v144_v1  ;;  %v280_v11 = vshrl.u32 %v249_v2, 16  ;;  %v145_v17 = vmul.u32 %v888_v19, %v91_v0 }
  0xae   :  { %v257_v18 = vand.u32 65535, %v253_v28  ;;  %v258_v20 = vshrl.u32 %v253_v28, 16  ;;  %v283_v24 = vmul.u32 %v279_v14, %v256_v10  ;;  %v281_v32 = vmul.u32 %v279_v14, %v255_v9 }
  0xaf   :  { %v149_v21 = vsel %vm147_vm15, %v148_v15, %v144_v1  ;;  %v282_v22 = vmul.u32 %v280_v11, %v255_v9  ;;  %v284_v34 = vmul.u32 %v280_v11, %v256_v10  ;;  %v243_v53 = vsel %vm241_vm12, %v948_v42, 2102212464 }
  0xb0   :  { %v150_v23 = vadd.s32 %v149_v21, %v145_v17  ;;  %v260_v30 = vmul.u32 %v258_v20, %v255_v9  ;;  %v261_v31 = vmul.u32 %v257_v18, %v256_v10  ;;  %v259_v39 = vmul.u32 %v257_v18, %v255_v9 }
  0xb1   :  { %v285_v36 = vshll.u32 %v282_v22, 16  ;;  %v262_v40 = vmul.u32 %v258_v20, %v256_v10  ;;  %v287_v35 = vshll.u32 %v283_v24, 16  ;;  %v222_v57 = vshrl.u32 %v839_v29, %v907_v49 }
  0xb2   :  { %v151_v37 = vadd.s32 536870912, %v150_v23  ;;  %v263_v45 = vshll.u32 %v260_v30, 16  ;;  %v265_v46 = vshll.u32 %v261_v31, 16  ;;  %v264_v60 = vshrl.u32 %v260_v30, 16 }
  0xb3   :  { %vm289_vm0 = vc.u32 %v281_v32, %v285_v36  ;;  %v291_v47 = vadd.s32 %v285_v36, %v281_v32  ;;  %v286_v61 = vshrl.u32 %v282_v22, 16  ;;  %v242_v41 = vsel %vm238_vm11, %v222_v57, %v937_v13 }
  0xb4   :  { %v998_v19 = vshrl.u32 %v151_v37, 30  ;;  %vm267_vm1 = vc.u32 %v259_v39, %v263_v45  ;;  %v269_v25 = vadd.s32 %v263_v45, %v259_v39  ;;  %v290_v33 = vsel %vm289_vm0, 1, %v845_v43 }
  0xb5   :  { %v268_v48 = vsel %vm267_vm1, 1, %v845_v43  ;;  %v292_v50 = vadd.s32 %v290_v33, %v284_v34  ;;  %vm293_vm2 = vc.u32 %v291_v47, %v287_v35  ;;  %v244_v42 = vsel %vm240_vm13, %v940_v16, %v243_v53 }
  0xb6   :  { %v153_v51 = vshll.u32 %v998_v19, 30  ;;  %v270_v52 = vadd.s32 %v268_v48, %v262_v40  ;;  %vm271_vm3 = vc.u32 %v269_v25, %v265_v46  ;;  %v294_v55 = vsel %vm293_vm2, 1, %v845_v43 }
  0xb7   :  { %v272_v54 = vsel %vm271_vm3, 1, %v845_v43  ;;  %v296_v38 = vadd.s32 %v294_v55, %v292_v50  ;;  %v266_v62 = vshrl.u32 %v261_v31, 16  ;;  %v288_v63 = vshrl.u32 %v283_v24, 16 }
  0xb8   :  { %v154_v56 = vsub.s32 %v150_v23, %v153_v51  ;;  %v274_v59 = vadd.s32 %v272_v54, %v270_v52  ;;  %v245_v3 = vsel %vm239_vm14, %v242_v41, %v244_v42  ;;  %v295_v7 = vadd.s32 %v291_v47, %v287_v35 }
  0xb9   :  { %v297_v0 = vadd.s32 %v296_v38, %v286_v61  ;;  %v299_v13 = vmul.u32 %v895_v27, %v245_v3  ;;  %v146_v28 = vadd.s32 %v962_v58, %v973_v44  ;;  %vm54_vm8 = vcmp.lt.s32.totalorder %v876_v4, 0 }
  0xba   :  { %vm155_vm4 = vcmp.lt.s32.totalorder %v154_v56, 0  ;;  %v156_v26 = vsub.s32 0, %v154_v56  ;;  %v275_v43 = vadd.s32 %v274_v59, %v264_v60  ;;  %vm1027_vm9 = vcmp.le.f32.partialorder %v52_v6, 0.7853982 }
  0xbb   :  { %v298_v2 = vadd.s32 %v297_v0, %v288_v63  ;;  %v176_v46 = vsub.s32 4, %v998_v19  ;;  %vm1040_vm12 = vcmp.le.f32.partialorder %v206_v8, 0.7853982  ;;  %vm208_vm13 = vcmp.lt.s32.totalorder %v878_v5, 0 }
  0xbc   :  { %v157_v1 = vsel %vm155_vm4, %v156_v26, %v154_v56  ;;  %v276_v49 = vadd.s32 %v275_v43, %v266_v62  ;;  %vm195_vm3 = vweird.f32 %v876_v4  ;;  %vm392_vm4 = vcmask 122880  }
  0xbd   :  { %v158_v29 = vclz %v157_v1  ;;  %v302_v14 = vadd.s32 1, %v298_v2  ;;  %v177_v33 = vsel %vm54_vm8, %v176_v46, %v998_v19 }
  0xbe   :  { %vm301_vm5 = vc.u32 %v276_v49, %v295_v7  ;;  %v300_v52 = vadd.s32 %v295_v7, %v276_v49 }
  0xbf   :  { %v790_v9 = vadd.s32 4294967294, %v158_v29  ;;  %v303_v16 = vsel %vm301_vm5, %v302_v14, %v298_v2 }
  0xc0   :  { %v304_v17 = vadd.s32 %v303_v16, %v299_v13 }
  0xc1   :  { %vm791_vm6 = vcmp.lt.s32.totalorder %v790_v9, 0 }
  0xc2   :  { %v161_v15 = vsel %vm791_vm6, 0, %v790_v9  ;;  %v305_v12 = vadd.s32 536870912, %v304_v17 }
  0xc3   :  { %v162_v10 = vsub.s32 32, %v161_v15  ;;  %v166_v11 = vsub.s32 4294967266, %v161_v15  ;;  %v163_v18 = vshll.u32 %v154_v56, %v161_v15  ;;  %v179_v56 = vsel %vm1027_vm9, 0, %v177_v33 }
  0xc4   :  { %v1021_v23 = vshrl.u32 %v305_v12, 30  ;;  %v553_v62 = vadd.s32 3, %v179_v56  ;;  %v196_v1 = vand.u32 3, %v179_v56 }
  0xc5   :  { %v164_v20 = vshrl.u32 %v146_v28, %v162_v10  ;;  %v167_v21 = vadd.s32 127, %v166_v11 }
  0xc6   :  { %v307_v31 = vshll.u32 %v1021_v23, 30  ;;  %v554_v7 = vand.u32 3, %v553_v62  ;;  %vm197_vm11 = vcmp.lt.s32.totalorder %v196_v1, 2  ;;  %vm198_vm14 = vcmp.eq.s32.totalorder %v196_v1, 0 }
  0xc7   :  { %v165_v22 = vor.u32 %v164_v20, %v163_v18  ;;  %v168_v24 = vshll.u32 %v167_v21, 23  ;;  %vm201_vm15 = vcmp.eq.s32.totalorder %v196_v1, 2 }
  0xc8   :  { %v308_v34 = vsub.s32 %v304_v17, %v307_v31  ;;  %vm555_vm0 = vcmp.lt.s32.totalorder %v554_v7, 2  ;;  %vm556_vm1 = vcmp.eq.s32.totalorder %v554_v7, 0  ;;  %vm559_vm2 = vcmp.eq.s32.totalorder %v554_v7, 2 }
  0xc9   :  { %v169_v30 = vor.u32 4788187, %v168_v24  ;;  %v172_v32 = vcvt.s32.f32 %v165_v22 }
  0xca   :  { %vm309_vm7 = vcmp.lt.s32.totalorder %v308_v34, 0  ;;  %v310_v58 = vsub.s32 0, %v308_v34 }
  0xcb   :  { %v170_v27 = vand.u32 2147483647, %v169_v30 }
  0xcc   :  { %v311_v37 = vsel %vm309_vm7, %v310_v58, %v308_v34 }
  0xcd   :  { %v173_v36 = vmul.f32 %v172_v32, %v170_v27  ;;  %v312_v39 = vclz %v311_v37  ;;  %v330_v32 = vsub.s32 4, %v1021_v23 }
  0xcf   :  { %v174_v44 = vxor.u32 2147483648, %v173_v36  ;;  %v793_v47 = vadd.s32 4294967294, %v312_v39 }
  0xd1   :  { %v175_v45 = vsel %vm54_vm8, %v174_v44, %v173_v36  ;;  %vm794_vm10 = vcmp.lt.s32.totalorder %v793_v47, 0 }
  0xd2   :  { %v178_v35 = vsel %vm1027_vm9, %v876_v4, %v175_v45  ;;  %v315_v51 = vsel %vm794_vm10, 0, %v793_v47  ;;  %v331_v45 = vsel %vm208_vm13, %v330_v32, %v1021_v23 }
  0xd3   :  { %v180_v25 = vmul.f32 %v178_v35, %v178_v35  ;;  %v316_v6 = vsub.s32 32, %v315_v51  ;;  %v320_v53 = vsub.s32 4294967266, %v315_v51  ;;  %v317_v57 = vshll.u32 %v308_v34, %v315_v51 }
  0xd5   :  { %v181_v48 = vmul.f32 -0.001358992, %v180_v25  ;;  %v188_v50 = vmul.f32 -0.00019511016, %v180_v25  ;;  %v318_v59 = vshrl.u32 %v300_v52, %v316_v6  ;;  %v321_v38 = vadd.s32 127, %v320_v53 }
  0xd7   :  { %v182_v54 = vadd.f32 0.041655596, %v181_v48  ;;  %v189_v55 = vadd.f32 0.008332121, %v188_v50  ;;  %v319_v26 = vor.u32 %v318_v59, %v317_v57  ;;  %v322_v41 = vshll.u32 %v321_v38, 23 }
  0xd8   :  { %v333_v50 = vsel %vm1040_vm12, 0, %v331_v45 }
  0xd9   :  { %v183_v60 = vmul.f32 %v182_v54, %v180_v25  ;;  %v190_v61 = vmul.f32 %v189_v55, %v180_v25  ;;  %v323_v43 = vor.u32 4788187, %v322_v41  ;;  %v326_v49 = vcvt.s32.f32 %v319_v26 }
  0xda   :  { %v708_v56 = vadd.s32 3, %v333_v50  ;;  %v350_v26 = vand.u32 3, %v333_v50 }
  0xdb   :  { %v184_v42 = vadd.f32 -0.4999988, %v183_v60  ;;  %v191_v19 = vadd.f32 -0.16666654, %v190_v61  ;;  %v324_v29 = vand.u32 2147483647, %v323_v43 }
  0xdc   :  { %v709_v41 = vand.u32 3, %v708_v56  ;;  %vm351_vm5 = vcmp.lt.s32.totalorder %v350_v26, 2  ;;  %vm352_vm6 = vcmp.eq.s32.totalorder %v350_v26, 0  ;;  %vm355_vm7 = vcmp.eq.s32.totalorder %v350_v26, 2 }
  0xdd   :  { %v185_v63 = vmul.f32 %v184_v42, %v180_v25  ;;  %v192_v0 = vmul.f32 %v191_v19, %v180_v25  ;;  %v327_v9 = vmul.f32 %v326_v49, %v324_v29 }
  0xde   :  { %vm710_vm8 = vcmp.lt.s32.totalorder %v709_v41, 2  ;;  %vm711_vm9 = vcmp.eq.s32.totalorder %v709_v41, 0  ;;  %vm714_vm10 = vcmp.eq.s32.totalorder %v709_v41, 2 }
  0xdf   :  { %v186_v2 = vadd.f32 1.0, %v185_v63  ;;  %v193_v3 = vadd.f32 1.0, %v192_v0  ;;  %v328_v16 = vxor.u32 2147483648, %v327_v9 }
  0xe1   :  { %v194_v14 = vmul.f32 %v193_v3, %v178_v35  ;;  %v202_v13 = vxor.u32 2147483648, %v186_v2  ;;  %v329_v11 = vsel %vm208_vm13, %v328_v16, %v327_v9 }
  0xe2   :  { %v332_v8 = vsel %vm1040_vm12, %v878_v5, %v329_v11 }
  0xe3   :  { %v199_v28 = vxor.u32 2147483648, %v194_v14  ;;  %v203_v10 = vsel %vm201_vm15, %v202_v13, %v194_v14  ;;  %v561_v20 = vsel %vm559_vm2, %v202_v13, %v194_v14  ;;  %v334_v22 = vmul.f32 %v332_v8, %v332_v8 }
  0xe5   :  { %v200_v17 = vsel %vm198_vm14, %v186_v2, %v199_v28  ;;  %v558_v18 = vsel %vm556_vm1, %v186_v2, %v199_v28  ;;  %v335_v34 = vmul.f32 -0.001358992, %v334_v22  ;;  %v342_v36 = vmul.f32 -0.00019511016, %v334_v22 }
  0xe6   :  { %v204_v21 = vsel %vm197_vm11, %v200_v17, %v203_v10  ;;  %v562_v12 = vsel %vm555_vm0, %v558_v18, %v561_v20  ;;  %vm349_vm11 = vweird.f32 %v878_v5 }
  0xe7   :  { %v205_v24 = vsel %vm195_vm3, nan, %v204_v21  ;;  %v563_v30 = vsel %vm195_vm3, nan, %v562_v12  ;;  %v336_v46 = vadd.f32 0.041655596, %v335_v34  ;;  %v343_v47 = vadd.f32 0.008332121, %v342_v36 }
  0xe8   :  { %v360_v31 = vmul.f32 0.17677669, %v205_v24  ;;  %v719_v27 = vmul.f32 0.17677669, %v563_v30 }
  0xe9   :  { %v337_v33 = vmul.f32 %v336_v46, %v334_v22  ;;  %v344_v51 = vmul.f32 %v343_v47, %v334_v22 }
  0xea   :  { %v364_v58 = vrot.slane %v360_v31, 1  ;;  %v365_v44 = vrot.slane %v360_v31, 2  ;;  %v366_v37 = vrot.slane %v360_v31, 3  ;;  %393 = vst.msk [vmem:[#allocation2] sm:$0x1] %vm392_vm4, %v360_v31  ;;  %v367_v39 = vrot.slane %v360_v31, 4 }
  0xeb   :  { %751 = vst.msk [vmem:[#allocation2 + $0x1] sm:$0x1] %vm392_vm4, %v719_v27  ;;  %v368_v4 = vrot.slane %v360_v31, 5  ;;  %v369_v40 = vrot.slane %v360_v31, 6  ;;  %v370_v35 = vrot.slane %v360_v31, 7  ;;  %v723_v25 = vrot.slane %v719_v27, 1 }
  0xec   :  { %394 = vst.msk [vmem:[#allocation2 + $0x2] sm:$0x1] %vm392_vm4, %v364_v58  ;;  %v724_v48 = vrot.slane %v719_v27, 2  ;;  %v725_v52 = vrot.slane %v719_v27, 3  ;;  %v338_v23 = vadd.f32 -0.4999988, %v337_v33 }
  0xed   :  { %395 = vst.msk [vmem:[#allocation2 + $0x4] sm:$0x1] %vm392_vm4, %v365_v44  ;;  %v726_v6 = vrot.slane %v719_v27, 4  ;;  %v345_v53 = vadd.f32 -0.16666654, %v344_v51  ;;  %v727_v54 = vrot.slane %v719_v27, 5 }
  0xee   :  { %396 = vst.msk [vmem:[#allocation2 + $0x6] sm:$0x1] %vm392_vm4, %v366_v37  ;;  %v339_v55 = vmul.f32 %v338_v23, %v334_v22  ;;  %v728_v57 = vrot.slane %v719_v27, 6  ;;  %v729_v38 = vrot.slane %v719_v27, 7 }
  0xef   :  { %397 = vst.msk [vmem:[#allocation2 + $0x8] sm:$0x1] %vm392_vm4, %v367_v39  ;;  %v346_v59 = vmul.f32 %v345_v53, %v334_v22 }
  0xf0   :  { %398 = vst.msk [vmem:[#allocation2 + $0xa] sm:$0x1] %vm392_vm4, %v368_v4  ;;  %v340_v60 = vadd.f32 1.0, %v339_v55 }
  0xf1   :  { %399 = vst.msk [vmem:[#allocation2 + $0xc] sm:$0x1] %vm392_vm4, %v369_v40  ;;  %v347_v61 = vadd.f32 1.0, %v346_v59 }
  0xf2   :  { %400 = vst.msk [vmem:[#allocation2 + $0xe] sm:$0x1] %vm392_vm4, %v370_v35  ;;  %v356_v19 = vxor.u32 2147483648, %v340_v60 }
  0xf3   :  { %752 = vst.msk [vmem:[#allocation2 + $0x3] sm:$0x1] %vm392_vm4, %v723_v25  ;;  %v348_v42 = vmul.f32 %v347_v61, %v332_v8 }
  0xf4   :  { %753 = vst.msk [vmem:[#allocation2 + $0x5] sm:$0x1] %vm392_vm4, %v724_v48 }
  0xf5   :  { %754 = vst.msk [vmem:[#allocation2 + $0x7] sm:$0x1] %vm392_vm4, %v725_v52  ;;  %v353_v62 = vxor.u32 2147483648, %v348_v42  ;;  %v357_v63 = vsel %vm355_vm7, %v356_v19, %v348_v42  ;;  %v716_v1 = vsel %vm714_vm10, %v356_v19, %v348_v42 }
  0xf6   :  { %755 = vst.msk [vmem:[#allocation2 + $0x9] sm:$0x1] %vm392_vm4, %v726_v6 }
  0xf7   :  { %756 = vst.msk [vmem:[#allocation2 + $0xb] sm:$0x1] %vm392_vm4, %v727_v54  ;;  %v354_v43 = vsel %vm352_vm6, %v340_v60, %v353_v62  ;;  %v713_v0 = vsel %vm711_vm9, %v340_v60, %v353_v62 }
  0xf8   :  { %757 = vst.msk [vmem:[#allocation2 + $0xd] sm:$0x1] %vm392_vm4, %v728_v57  ;;  %v358_v29 = vsel %vm351_vm5, %v354_v43, %v357_v63  ;;  %v717_v49 = vsel %vm710_vm8, %v713_v0, %v716_v1 }
  0xf9   :  { %758 = vst.msk [vmem:[#allocation2 + $0xf] sm:$0x1] %vm392_vm4, %v729_v38  ;;  %v359_v2 = vsel %vm349_vm11, nan, %v358_v29  ;;  %v718_v3 = vsel %vm349_vm11, nan, %v717_v49 }
  0xfa   :  { %v361_v7 = vmul.f32 0.17677669, %v359_v2  ;;  %v720_v9 = vmul.f32 0.17677669, %v718_v3 }
  0xfc   :  { %v371_v14 = vrot.slane %v361_v7, 1  ;;  %v372_v13 = vrot.slane %v361_v7, 2  ;;  %v373_v15 = vrot.slane %v361_v7, 3  ;;  %401 = vst.msk [vmem:[#allocation2 + $0x10] sm:$0x1] %vm392_vm4, %v361_v7  ;;  %v374_v16 = vrot.slane %v361_v7, 4 }
  0xfd   :  { %759 = vst.msk [vmem:[#allocation2 + $0x11] sm:$0x1] %vm392_vm4, %v720_v9  ;;  %v375_v28 = vrot.slane %v361_v7, 5  ;;  %v376_v10 = vrot.slane %v361_v7, 6  ;;  %v377_v5 = vrot.slane %v361_v7, 7  ;;  %v730_v11 = vrot.slane %v720_v9, 1 }
  0xfe   :  { %402 = vst.msk [vmem:[#allocation2 + $0x12] sm:$0x1] %vm392_vm4, %v371_v14  ;;  %v731_v17 = vrot.slane %v720_v9, 2  ;;  %v732_v18 = vrot.slane %v720_v9, 3  ;;  %v733_v20 = vrot.slane %v720_v9, 4  ;;  %v734_v8 = vrot.slane %v720_v9, 5 }
  0xff   :  { %403 = vst.msk [vmem:[#allocation2 + $0x14] sm:$0x1] %vm392_vm4, %v372_v13  ;;  %v735_v21 = vrot.slane %v720_v9, 6  ;;  %v736_v12 = vrot.slane %v720_v9, 7 }
 0x100   :  { %404 = vst.msk [vmem:[#allocation2 + $0x16] sm:$0x1] %vm392_vm4, %v373_v15 }
 0x101   :  { %405 = vst.msk [vmem:[#allocation2 + $0x18] sm:$0x1] %vm392_vm4, %v374_v16 }
 0x102   :  { %406 = vst.msk [vmem:[#allocation2 + $0x1a] sm:$0x1] %vm392_vm4, %v375_v28 }
 0x103   :  { %407 = vst.msk [vmem:[#allocation2 + $0x1c] sm:$0x1] %vm392_vm4, %v376_v10 }
 0x104   :  { %408 = vst.msk [vmem:[#allocation2 + $0x1e] sm:$0x1] %vm392_vm4, %v377_v5 }
 0x105   :  { %760 = vst.msk [vmem:[#allocation2 + $0x13] sm:$0x1] %vm392_vm4, %v730_v11 }
 0x106   :  { %761 = vst.msk [vmem:[#allocation2 + $0x15] sm:$0x1] %vm392_vm4, %v731_v17 }
 0x107   :  { %762 = vst.msk [vmem:[#allocation2 + $0x17] sm:$0x1] %vm392_vm4, %v732_v18 }
 0x108   :  { %763 = vst.msk [vmem:[#allocation2 + $0x19] sm:$0x1] %vm392_vm4, %v733_v20 }
 0x109   :  { %764 = vst.msk [vmem:[#allocation2 + $0x1b] sm:$0x1] %vm392_vm4, %v734_v8 }
 0x10a   :  { %765 = vst.msk [vmem:[#allocation2 + $0x1d] sm:$0x1] %vm392_vm4, %v735_v21 }
 0x10b   :  { %766 = vst.msk [vmem:[#allocation2 + $0x1f] sm:$0x1] %vm392_vm4, %v736_v12 }
 0x10c   :  { %779 = dma.vmem_to_hbm [thread:$0]  %s772_s1, 512, %s774_s19, [#allocation3], %s847_s20, %s847_s20, %s848_s21  }
 0x10d   :  { %837 = dma.done.wait [#allocation3], 512  }
 0x10e   :  { %838 = vsyncadd [#allocation3], 4294966784 }
 0x10f   :  { %784 = vsyncpa [#allocation3], 1 }

</bundles_post_ra>
